<compile_context>
chip_gen: v7x
topology: tpu7x:2x2x1
jax: 0.10.0
libtpu: 0.0.40
codegen_flags: <defaults>
</compile_context>

<pallas_src>
import functools

import jax
import jax.numpy as jnp
from jax.experimental import pallas as pl
from jax.experimental.pallas import tpu as pltpu


# -----------------------------------------------------------------------------
# Pallas kernel:  y_row = theta_row @ F_test^T   (lane-dense (1, n) output)
# -----------------------------------------------------------------------------
def _row_matvec_kernel(t_ref, ft_ref, o_ref):
    # t_ref : (1, K)   theta row, resident in VMEM for the whole grid
    # ft_ref: (K, tn)  streamed tile of F_test^T
    # o_ref : (1, tn)  lane-dense output tile, written exactly once
    o_ref[...] = jnp.dot(
        t_ref[...], ft_ref[...], preferred_element_type=jnp.float32
    ).astype(o_ref.dtype)


@functools.partial(jax.jit, static_argnames=("tn",))
def _pallas_row_matvec(theta_row, ft_padded, *, tn):
    """(1, K) @ (K, n_pad) -> (1, n_pad), tiled over n_pad in chunks of tn."""
    K, n_pad = ft_padded.shape
    assert n_pad % tn == 0
    return pl.pallas_call(
        _row_matvec_kernel,
        out_shape=jax.ShapeDtypeStruct((1, n_pad), ft_padded.dtype),
        grid_spec=pltpu.PrefetchScalarGridSpec(
            num_scalar_prefetch=0,
            grid=(n_pad // tn,),
            in_specs=[
                pl.BlockSpec((1, K), lambda j: (0, 0)),    # theta: resident
                pl.BlockSpec((K, tn), lambda j: (0, j)),   # F^T: streamed tiles
            ],
            out_specs=pl.BlockSpec((1, tn), lambda j: (0, j)),
        ),
        compiler_params=pltpu.CompilerParams(
            dimension_semantics=("parallel",),  # row-parallel: dual-TC on v7x
        ),
    )(theta_row, ft_padded)


def _round_up(x, m):
    return ((x + m - 1) // m) * m


def _choose_col_tile(K, n, itemsize, budget_bytes=4 << 20):
    """Largest multiple-of-128 column tile whose (K, tn) buffer fits the budget."""
    lane = 128
    per_col = max(K * itemsize, 1)
    max_tn = max(lane, (budget_bytes // per_col) // lane * lane)
    # TODO(synk): for K so large that (K, 128) alone blows VMEM, tile K too.
    return int(min(_round_up(max(n, 1), lane), max_tn))


def pallas_matvec_T(ft_padded, theta, n_out, tn):
    """y = (F_test @ theta)[:n_out] given the padded transposed features."""
    theta_row = theta.reshape(1, -1).astype(ft_padded.dtype)
    out = _pallas_row_matvec(theta_row, ft_padded, tn=tn)
    return out[0, :n_out]


# -----------------------------------------------------------------------------
# Model (parameter setup in plain JAX, forward hot path in Pallas)
# -----------------------------------------------------------------------------
ZERO_REGULARIZATION = 1e-10


def _rbf_kernel_matrix(X1, X2):
    d = X1.shape[1]
    sq = (
        jnp.sum(X1 * X1, axis=1, keepdims=True)
        - 2.0 * X1 @ X2.T
        + jnp.sum(X2 * X2, axis=1, keepdims=True).T
    )
    return jnp.exp(-sq / (2.0 * d))


class RandomFeatureModelGaussianUniversality:
    def __init__(self, data_dimension, num_features, ridge,
                 F_train, F_test, X_train, X_test, theta):
        self.data_dimension = data_dimension
        self.num_features = num_features
        self.ridge = max(ridge, ZERO_REGULARIZATION)
        self.F_train = F_train
        self.F_test = F_test
        self.X_train = X_train
        self.X_test = X_test
        self.theta = theta

        # ---- layout plumbing for the Pallas forward pass (done once) --------
        n_test = F_test.shape[0]
        self._n_test = n_test
        self._tn = _choose_col_tile(num_features, n_test, F_test.dtype.itemsize)
        n_pad = _round_up(n_test, self._tn)
        ft = F_test.T  # (K, n_test): columns = test points -> lane axis
        if n_pad != n_test:
            ft = jnp.pad(ft, ((0, 0), (0, n_pad - n_test)))
        self._F_test_T = ft  # (K, n_pad)

    @staticmethod
    def create_model(data_dimension, num_features, ridge, X_train, X_test, key):
        # initialize_parameters: K = k(X_all, X_all); F_all = U sqrt(D) G / sqrt(p)
        X_all = jnp.concatenate([X_train, X_test], axis=0)
        K = _rbf_kernel_matrix(X_all, X_all)
        D, U = jnp.linalg.eigh(K)
        D = jnp.where(D < 0, 0.0, D)
        R = U @ jnp.diag(jnp.sqrt(D))
        G = jax.random.normal(key, (R.shape[1], num_features), dtype=jnp.float32)
        F_all = (R @ G) / jnp.sqrt(jnp.float32(num_features))
        n_train = X_train.shape[0]
        F_train = F_all[:n_train, :]
        F_test = F_all[n_train:, :]
        theta = jnp.zeros((num_features,), dtype=jnp.float32)
        return RandomFeatureModelGaussianUniversality(
            data_dimension, num_features, ridge,
            F_train, F_test, X_train, X_test, theta)

    def learn_theta(self, X_train, y_train):
        if not bool(jnp.array_equal(X_train, self.X_train)):
            raise ValueError("X_train must be the same as the one used for init.")
        n_train = self.F_train.shape[0]
        if n_train >= self.num_features:
            A = self.F_train.T @ self.F_train + self.ridge * jnp.eye(self.num_features)
            b = self.F_train.T @ y_train[:, None]
            self.theta = jnp.linalg.solve(A, b)[:, 0]
        else:
            A = self.F_train @ self.F_train.T + self.ridge * jnp.eye(n_train)
            alpha = jnp.linalg.solve(A, y_train[:, None])[:, 0]
            self.theta = self.F_train.T @ alpha
        resid = self.F_train @ self.theta - y_train
        return jnp.mean(resid * resid)

    def _forward_all(self):
        # Single cached Pallas kernel instance for every forward call.
        return pallas_matvec_T(self._F_test_T, self.theta, self._n_test, self._tn)

    def forward(self, x):
        x = jnp.squeeze(x)
        if x.ndim == 1 and x.shape[0] == self.data_dimension:
            # single-test-point path: dot(F_test[index], theta)
            matches = jnp.all(self.X_test == x[None, :], axis=1)
            if not bool(jnp.any(matches)):
                raise ValueError("x must be one of the initially used test points.")
            index = int(jnp.argmax(matches))
            # Reuse the cached batched kernel and slice (no fresh (1, K) compile).
            return self._forward_all()[index]
        else:
            if x.ndim == 1:
                x = x[:, None]
            if not bool(jnp.array_equal(x, self.X_test)):
                raise ValueError("x must be the same as the one used for init.")
            # batch path: torch.mv(F_test, theta)  -> Pallas kernel
            return self._forward_all()


# -----------------------------------------------------------------------------
if __name__ == "__main__":
    key = jax.random.PRNGKey(0)
    k_xtr, k_xte, k_y, k_feat = jax.random.split(key, 4)

    data_dimension = 4
    num_features = 256
    n_train, n_test = 16, 8
    ridge = 1e-3

    X_train = jax.random.normal(k_xtr, (n_train, data_dimension), dtype=jnp.float32)
    X_test = jax.random.normal(k_xte, (n_test, data_dimension), dtype=jnp.float32)
    y_train = jax.random.normal(k_y, (n_train,), dtype=jnp.float32)

    model = RandomFeatureModelGaussianUniversality.create_model(
        data_dimension, num_features, ridge, X_train, X_test, k_feat)
    model.learn_theta(X_train, y_train)

    # forward on the full test set (hot path runs in the Pallas kernel)
    y_pred = model.forward(X_test)
    y_pred = jax.block_until_ready(y_pred)

    # reference check against plain JAX mat-vec
    y_ref = model.F_test @ model.theta
    assert y_pred.shape == (n_test,)
    assert jnp.allclose(y_pred, y_ref, atol=1e-5, rtol=1e-5)

    # single-test-point path (reuses the cached batched kernel)
    y0 = jax.block_until_ready(model.forward(X_test[0]))
    assert jnp.allclose(y0, y_ref[0], atol=1e-5, rtol=1e-5)

    print("KERNEL_OK")
</pallas_src>

<mosaic_0001>
module attributes {stable_mosaic.version = 11 : i64} {
  func.func @_row_matvec_kernel(%arg0: i32, %arg1: memref<1x256xf32, #tpu.memory_space<vmem>>, %arg2: memref<256x128xf32, #tpu.memory_space<vmem>>, %arg3: memref<1x128xf32, #tpu.memory_space<vmem>>) attributes {dimension_semantics = [#tpu.dimension_semantics<parallel>], iteration_bounds = array<i64: 1>, scalar_prefetch = 0 : i64, scratch_operands = 0 : i64, tpu.core_type = #tpu.core_type<tc>, window_params = [{pipeline_mode = #tpu.pipeline_mode<synchronous>, transform_indices = @transform_0, window_bounds = array<i64: 1, 256>}, {transform_indices = @transform_1, window_bounds = array<i64: 256, 128>}, {transform_indices = @transform_2, window_bounds = array<i64: 1, 128>}]} {
    %c0 = arith.constant 0 : index
    %c0_0 = arith.constant 0 : index
    %0 = vector.load %arg1[%c0, %c0_0] : memref<1x256xf32, #tpu.memory_space<vmem>>, vector<1x256xf32>
    %c0_1 = arith.constant 0 : index
    %c0_2 = arith.constant 0 : index
    %1 = vector.load %arg2[%c0_1, %c0_2] : memref<256x128xf32, #tpu.memory_space<vmem>>, vector<256x128xf32>
    %cst = arith.constant dense<0.000000e+00> : vector<1x128xf32>
    %2 = tpu.matmul %0, %1, %cst {dimension_numbers = #tpu.dot_dimension_numbers<[1], [0], [0], [1], [0, 0, 1, 1], [], []>} : vector<1x256xf32>, vector<256x128xf32>, vector<1x128xf32> -> vector<1x128xf32>
    %c0_3 = arith.constant 0 : index
    %c0_4 = arith.constant 0 : index
    %3 = vector.load %arg3[%c0_3, %c0_4] : memref<1x128xf32, #tpu.memory_space<vmem>>, vector<1x128xf32>
    tpu.vector_store %arg3[%c0_3, %c0_4], %2 {strides = array<i32>} : memref<1x128xf32, #tpu.memory_space<vmem>>, vector<1x128xf32>,
    return
  }
  func.func @transform_0(%arg0: i32) -> (i32, i32) {
    %c0_i32 = arith.constant 0 : i32
    %c0_i32_0 = arith.constant 0 : i32
    %c0_i32_1 = arith.constant 0 : i32
    return %c0_i32, %c0_i32_0 : i32, i32
  }
  func.func @transform_1(%arg0: i32) -> (i32, i32) {
    %c0_i32 = arith.constant 0 : i32
    %c0_i32_0 = arith.constant 0 : i32
    return %c0_i32, %arg0 : i32, i32
  }
  func.func @transform_2(%arg0: i32) -> (i32, i32) {
    %c0_i32 = arith.constant 0 : i32
    %c0_i32_0 = arith.constant 0 : i32
    return %c0_i32, %arg0 : i32, i32
  }
}

</mosaic_0001>

<bundles_post_ra>
// kernel: _pallas_row_matvec.1
= control target key start
LH: loop header
LB: loop body
LE: loop exit
PB: predicated region body
PF: predicated region fallthrough
CT: control target
= control target key end

     0   :  { %7 = vsyncpa [#allocation3], 0  ;;  %s376_s0 = inlined_call_operand.hbm [shape: f32[1,256], index: 0, kind: input, shape index: {}]   ;;  %s377_s1 = inlined_call_operand.hbm [shape: f32[256,128], index: 1, kind: input, shape index: {}]   ;;  %s378_s2 = inlined_call_operand.hbm [shape: f32[1,128], index: 2, kind: output, shape index: {}]  }
   0x1   :  { %8 = vsyncpa [#allocation6], 0 }
   0x2   :  { %9 = vsyncpa [#allocation4], 0  ;;  %s313_s9 = smov [#allocation2]   ;;  %s314_s11 = smov [#allocation5]  }
   0x3   :  { %s16_s10 = sshll.u32 %s313_s9, 4  ;;  %s25_s12 = sshll.u32 %s314_s11, 4  ;;  %s17_s10 = int_to_ptr.vmem [resolvable:$true] %s16_s10  ;;  %s333_s12 = int_to_ptr.vmem [resolvable:$true] %s25_s12 }
   0x4   :  { %s241_s15 = scalar_lea.hbm %s376_s0, 32 }
   0x5   :  { %p242_p0 = scmp.ne.s32.totalorder %s376_s0, %s241_s15  ;;  %p245_p1 = scmp.lt.u32.totalorder %s241_s15, %s376_s0 }
   0x7   :  { %p247_p2 = pnand %p245_p1, %p242_p0 }
   0x9   :  { %250 = shalt.err (!%p247_p2)
}
   0xa   :  { %s251_s20 = scalar_lea.vmem %s17_s10, 32  ;;  %p256_p4 = scmp.lt.s32.totalorder %s17_s10, %s17_s10 }
   0xb   :  { %p252_p3 = scmp.ne.s32.totalorder %s17_s10, %s251_s20  ;;  %p257_p5 = scmp.lt.s32.totalorder %s251_s20, %s251_s20 }
   0xd   :  { %p258_p6 = por %p257_p5, %p256_p4 }
   0xf   :  { %p259_p7 = pnand %p258_p6, %p252_p3 }
  0x11   :  { %262 = shalt.err (!%p259_p7)
}
  0x12   :  { %19 = dma.hbm_to_vmem [thread:$0]  %s376_s0, 32, %s17_s10, [#allocation3]  }
  0x13   :  { %s263_s25 = scalar_lea.hbm %s377_s1, 4096 }
  0x14   :  { %p264_p8 = scmp.ne.s32.totalorder %s377_s1, %s263_s25  ;;  %p267_p9 = scmp.lt.u32.totalorder %s263_s25, %s377_s1 }
  0x16   :  { %p269_p10 = pnand %p267_p9, %p264_p8 }
  0x18   :  { %272 = shalt.err (!%p269_p10)
}
  0x19   :  { %s273_s30 = scalar_lea.vmem %s333_s12, 4096  ;;  %p278_p12 = scmp.lt.s32.totalorder %s333_s12, %s333_s12 }
  0x1a   :  { %p274_p11 = scmp.ne.s32.totalorder %s333_s12, %s273_s30  ;;  %p279_p13 = scmp.lt.s32.totalorder %s273_s30, %s273_s30 }
  0x1c   :  { %p280_p0 = por %p279_p13, %p278_p12 }
  0x1e   :  { %p281_p1 = pnand %p280_p0, %p274_p11 }
  0x20   :  { %284 = shalt.err (!%p281_p1)
}
  0x21   :  { %s315_s0 = smov 128   ;;  %s316_s3 = smov 8  }
  0x22   :  { %31 = dma.hbm_to_vmem [thread:$0]  %s377_s1, 4096, %s333_s12, [#allocation6], %s315_s0, %s315_s0, %s316_s3  }
  0x23   :  { %307 = dma.done.wait [#allocation3], 32  }
  0x24   :  { %308 = vsyncadd [#allocation3], 4294967264 }
  0x25   :  { %309 = dma.done.wait [#allocation6], 4096  }
  0x26   :  { %310 = vsyncadd [#allocation6], 4294963200  ;;  %v72_v0 = vlaneseq  ;;  %v55_v1 = vld [vmem:[#allocation5 + $0x80] sm:$0xff]  ;;  %v56_v2 = vld [vmem:[#allocation5 + $0x88] sm:$0xff]  ;;  %s317_s1 = smov [#allocation7]  }
  0x27   :  { %v39_v3 = vld [vmem:[#allocation5] sm:$0xff]  ;;  %v204_v4 = vpack.c.bf16 %v56_v2, %v55_v1  ;;  %v40_v5 = vld [vmem:[#allocation5 + $0x8] sm:$0xff]  ;;  %v57_v6 = vld [vmem:[#allocation5 + $0x90] sm:$0xff]  ;;  %s159_s6 = sshll.u32 %s317_s1, 4  ;;  %s160_s6 = int_to_ptr.vmem [resolvable:$true] %s159_s6 }
  0x28   :  { %v58_v7 = vld [vmem:[#allocation5 + $0x98] sm:$0xff]  ;;  %v206_v8 = vpack.c.bf16 %v40_v5, %v39_v3  ;;  %v41_v10 = vld [vmem:[#allocation5 + $0x10] sm:$0xff]  ;;  %v59_v12 = vld [vmem:[#allocation5 + $0xa0] sm:$0xff]  ;;  %v73_v14 = vshrl.u32 %v72_v0, 7  ;;  %s285_s7 = scalar_lea.vmem %s160_s6, 16  ;;  %s289_s8 = scalar_lea.vmem %s160_s6, 32 }
  0x29   :  { %v208_v9 = vpack.c.bf16 %v58_v7, %v57_v6  ;;  %v42_v11 = vld [vmem:[#allocation5 + $0x18] sm:$0xff]  ;;  %205 = vmatprep.subr.bf16.mxu0 %v204_v4  ;;  %v60_v13 = vld [vmem:[#allocation5 + $0xa8] sm:$0xff]  ;;  %v43_v17 = vld [vmem:[#allocation5 + $0x20] sm:$0xff]  ;;  %p286_p2 = scmp.ne.s32.totalorder %s160_s6, %s285_s7  ;;  %p290_p3 = scmp.lt.s32.totalorder %s160_s6, %s160_s6 }
  0x2a   :  { %207 = vmatpush3.bf16.msra.mxu0 %v206_v8  ;;  %v210_v15 = vpack.c.bf16 %v42_v11, %v41_v10  ;;  %v212_v16 = vpack.c.bf16 %v60_v13, %v59_v12  ;;  %v44_v18 = vld [vmem:[#allocation5 + $0x28] sm:$0xff]  ;;  %v61_v19 = vld [vmem:[#allocation5 + $0xb0] sm:$0xff]  ;;  %v62_v20 = vld [vmem:[#allocation5 + $0xb8] sm:$0xff]  ;;  %v78_v21 = vsub.s32 1, %v73_v14  ;;  %v74_v52 = vsub.s32 0, %v73_v14  ;;  %p291_p4 = scmp.lt.s32.totalorder %s289_s8, %s285_s7 }
  0x2b   :  { %209 = vmatprep.subr.bf16.mxu0 %v208_v9  ;;  %v214_v22 = vpack.c.bf16 %v44_v18, %v43_v17  ;;  %v216_v23 = vpack.c.bf16 %v62_v20, %v61_v19  ;;  %v45_v24 = vld [vmem:[#allocation5 + $0x30] sm:$0xff]  ;;  %v46_v25 = vld [vmem:[#allocation5 + $0x38] sm:$0xff]  ;;  %v63_v26 = vld [vmem:[#allocation5 + $0xc0] sm:$0xff] }
  0x2c   :  { %v64_v27 = vld [vmem:[#allocation5 + $0xc8] sm:$0xff]  ;;  %v38_v28 = vld [vmem:[#allocation2] sm:$0x3]  ;;  %v218_v30 = vpack.c.bf16 %v46_v25, %v45_v24  ;;  %v47_v32 = vld [vmem:[#allocation5 + $0x40] sm:$0xff]  ;;  %p292_p5 = por %p291_p4, %p290_p3 }
  0x2d   :  { %v79_v29 = vrot.slane %v38_v28, %v78_v21  ;;  %v220_v31 = vpack.c.bf16 %v64_v27, %v63_v26  ;;  %v48_v33 = vld [vmem:[#allocation5 + $0x48] sm:$0xff]  ;;  %v65_v34 = vld [vmem:[#allocation5 + $0xd0] sm:$0xff]  ;;  %v66_v35 = vld [vmem:[#allocation5 + $0xd8] sm:$0xff]  ;;  %v75_v54 = vrot.slane %v38_v28, %v74_v52 }
  0x2e   :  { %211 = vmatpush3.bf16.msra.mxu0 %v210_v15  ;;  %v222_v36 = vpack.c.bf16 %v48_v33, %v47_v32  ;;  %v224_v37 = vpack.c.bf16 %v66_v35, %v65_v34  ;;  %v49_v38 = vld [vmem:[#allocation5 + $0x50] sm:$0xff]  ;;  %v50_v39 = vld [vmem:[#allocation5 + $0x58] sm:$0xff]  ;;  %v67_v40 = vld [vmem:[#allocation5 + $0xe0] sm:$0xff]  ;;  %p293_p6 = pnand %p292_p5, %p286_p2 }
  0x2f   :  { %213 = vmatprep.subr.bf16.mxu0 %v212_v16  ;;  %146 = vmatprep.mubr.f32.mxu0 %v79_v29  ;;  %v68_v41 = vld [vmem:[#allocation5 + $0xe8] sm:$0xff]  ;;  %v226_v42 = vpack.c.bf16 %v50_v39, %v49_v38  ;;  %v51_v44 = vld [vmem:[#allocation5 + $0x60] sm:$0xff]  ;;  %v69_v46 = vld [vmem:[#allocation5 + $0xf0] sm:$0xff] }
  0x30   :  { %v228_v43 = vpack.c.bf16 %v68_v41, %v67_v40  ;;  %v52_v45 = vld [vmem:[#allocation5 + $0x68] sm:$0xff]  ;;  %v70_v47 = vld [vmem:[#allocation5 + $0xf8] sm:$0xff]  ;;  %v53_v50 = vld [vmem:[#allocation5 + $0x70] sm:$0xff] }
  0x31   :  { %v230_v48 = vpack.c.bf16 %v52_v45, %v51_v44  ;;  %v232_v49 = vpack.c.bf16 %v70_v47, %v69_v46  ;;  %v54_v51 = vld [vmem:[#allocation5 + $0x78] sm:$0xff] }
  0x32   :  { %215 = vmatpush3.bf16.msra.mxu0 %v214_v22  ;;  %v234_v53 = vpack.c.bf16 %v54_v51, %v53_v50 }
  0x33   :  { %217 = vmatprep.subr.bf16.mxu0 %v216_v23 }
  0x36   :  { %219 = vmatpush3.bf16.msra.mxu0 %v218_v30 }
  0x37   :  { %221 = vmatprep.subr.bf16.mxu0 %v220_v31 }
  0x3a   :  { %223 = vmatpush3.bf16.msra.mxu0 %v222_v36 }
  0x3b   :  { %225 = vmatprep.subr.bf16.mxu0 %v224_v37 }
  0x3e   :  { %227 = vmatpush3.bf16.msra.mxu0 %v226_v42 }
  0x3f   :  { %229 = vmatprep.subr.bf16.mxu0 %v228_v43 }
  0x42   :  { %231 = vmatpush3.bf16.msra.mxu0 %v230_v48 }
  0x43   :  { %233 = vmatprep.subr.bf16.mxu0 %v232_v49 }
  0x46   :  { %235 = vmatpush3.bf16.msra.mxu0 %v234_v53 }
  0x49   :  { %147 = vmatmul.mubr.f32.vlgmr.msra.gmra.mrb[0].mxu0 %v75_v54 }
 0x11c   :  { %v201_v55 = vpop.f32.mrb[0].mxu0 }
 0x11d   :  { %v202_v56 = vpop.f32.mrb[1].mxu0 }
 0x11e   :  { %v203_v57 = vadd.f32 %v202_v56, %v201_v55 }
 0x120   :  { %152 = vst [vmem:[#allocation7] sm:$0x1] %v203_v57 }
 0x121   :  { %296 = shalt.err (!%p293_p6)
}
 0x122   :  { %s297_s11 = scalar_lea.hbm %s378_s2, 16 }
 0x123   :  { %p298_p7 = scmp.ne.s32.totalorder %s378_s2, %s297_s11  ;;  %p301_p8 = scmp.lt.u32.totalorder %s297_s11, %s378_s2 }
 0x125   :  { %p303_p9 = pnand %p301_p8, %p298_p7 }
 0x127   :  { %306 = shalt.err (!%p303_p9)
}
 0x128   :  { %162 = dma.vmem_to_hbm [thread:$0]  %s160_s6, 16, %s378_s2, [#allocation4]  }
 0x129   :  { %311 = dma.done.wait [#allocation4], 16  }
 0x12a   :  { %312 = vsyncadd [#allocation4], 4294967280 }
 0x12b   :  { %166 = vsyncpa [#allocation3], 1 }
 0x12c   :  { %167 = vsyncpa [#allocation6], 1 }
 0x12d   :  { %168 = vsyncpa [#allocation4], 1 }

</bundles_post_ra>
